<compile_context>
chip_gen: v6e
topology: v6e:2x2x1
jax: 0.10.0
libtpu: 0.0.40
codegen_flags: <defaults>
</compile_context>

<pallas_src>
import jax
import jax.numpy as jnp
from jax.experimental import pallas as pl
from jax.experimental.pallas import tpu as pltpu


# ----------------------------- Pallas kernel -----------------------------
def _make_kernel(BB, N_s, L_c, L_q, N_a, L_a, L_a_pad, D, H):
    """Kernel closure for one batch block of BB examples (word axes padded)."""
    CO_ROWS = N_s * L_c          # context word rows per example
    Q_ROWS = L_q                 # question word rows per example
    A_ROWS = N_a * L_a_pad       # answer word rows per example (padded)

    def kernel(co_ref, q_ref, a_ref,
               wc_ref, wq_ref, wa_ref,
               bc_ref, bq_ref, ba_ref,
               out_ref):
        f32 = jnp.float32
        b_c = bc_ref[...]                                   # (1, H) f32
        b_q = bq_ref[...]
        b_a = ba_ref[...]

        # ---------------- Encoder: three MXU dots, f32 accumulation ----------------
        # context: project every word, sum words post-dot (linear => exact), bias+tanh
        co = co_ref[...].reshape(BB * CO_ROWS, D)
        co_proj = jnp.dot(co, wc_ref[...], preferred_element_type=f32)
        c = jnp.tanh(jnp.sum(co_proj.reshape(BB, N_s, L_c, H), axis=2) + b_c)   # (BB,N_s,H)

        # question: same bag-of-words treatment
        qw = q_ref[...].reshape(BB * Q_ROWS, D)
        q_proj = jnp.dot(qw, wq_ref[...], preferred_element_type=f32)
        q = jnp.tanh(jnp.sum(q_proj.reshape(BB, L_q, H), axis=1) + b_q)         # (BB,H)

        # answers: per-word bias + tanh, then sum over words (MA)
        aw = a_ref[...].reshape(BB * A_ROWS, D)
        a_proj = jnp.dot(aw, wa_ref[...], preferred_element_type=f32)
        a_act = jnp.tanh(a_proj.reshape(BB, N_a, L_a_pad, H) + b_a)
        if L_a_pad != L_a:
            # mask padded word rows (robust even if pad contents were garbage)
            word_ids = jax.lax.broadcasted_iota(jnp.int32, (L_a_pad, H), 0)
            a_act = jnp.where(word_ids < L_a, a_act, 0.0)
        MA = jnp.sum(a_act, axis=2)                                             # (BB,N_a,H)

        # ---------------- Controller (POC): attention of q over context memory ----------------
        scores = jnp.sum(c * q[:, None, :], axis=-1)        # (BB, N_s)  VPU mul + lane reduce
        s_max = jnp.max(scores, axis=-1, keepdims=True)     # (BB, 1)
        e = jnp.exp(scores - s_max)
        attn = e / jnp.sum(e, axis=-1, keepdims=True)       # exact reciprocal
        o = jnp.sum(attn[:, :, None] * c, axis=1)           # (BB, H)
        conf = jax.nn.sigmoid(s_max)                        # (BB, 1)

        # ---------------- Decoder: softmax over answer candidates ----------------
        logits = jnp.sum(o[:, None, :] * MA, axis=-1)       # (BB, N_a)
        l_max = jnp.max(logits, axis=-1, keepdims=True)
        pe = jnp.exp(logits - l_max)
        p = pe / jnp.sum(pe, axis=-1, keepdims=True)         # exact reciprocal

        out_ref[...] = (conf * p).astype(out_ref.dtype)      # (BB, N_a)

    return kernel


# ----------------------------- batch-block sizing -----------------------------
def _num_tensorcores():
    """Best-effort TensorCore-per-device count (v7x has 2); fallback 1."""
    try:
        d = jax.devices()[0]
        for attr in ("num_cores", "core_count", "num_tensorcores"):
            v = getattr(d, attr, None)
            if isinstance(v, int) and v > 0:
                return v
    except Exception:
        pass
    return 1


def _choose_batch_block(B, per_example_bytes, vmem_budget_bytes, num_cores):
    cdiv = lambda a, b: -(-a // b)
    cap = max(1, int(vmem_budget_bytes) // max(int(per_example_bytes), 1))
    want = min(cap, B)
    if num_cores > 1 and B >= 8 * num_cores:
        # keep >= num_cores "parallel" grid steps so every TensorCore gets work (v7x)
        want = min(want, cdiv(B, num_cores))
    if want >= B:
        return B                    # single step: block == full batch (v5e/v6e preference)
    want = max(8, (want // 8) * 8)  # out-block sublane alignment when BB < B
    n_steps = cdiv(B, want)
    bb = cdiv(cdiv(B, n_steps), 8) * 8   # rebalance to minimize batch padding
    return B if bb >= B else bb


# ----------------------------- wrapper -----------------------------
def module_net_forward(CO, Q, A, params, *,
                       compute_dtype=jnp.bfloat16,
                       vmem_budget_bytes=8 * 1024 * 1024,
                       batch_block=None):
    B, N_s, L_c, D = CO.shape
    _, L_q, _ = Q.shape
    _, N_a, L_a, _ = A.shape
    H = params['W_c'].shape[1]

    # --- layout plumbing: pad word axes to sublane multiples (usually a no-op) ---
    def pad_axis_to8(x, axis):
        pad = (-x.shape[axis]) % 8
        if pad == 0:
            return x
        widths = [(0, 0)] * x.ndim
        widths[axis] = (0, pad)
        return jnp.pad(x, widths)

    CO_p = pad_axis_to8(CO, 2).astype(compute_dtype)   # zero word rows add 0 pre-activation
    Q_p = pad_axis_to8(Q, 1).astype(compute_dtype)     # zero word rows add 0 pre-activation
    A_p = pad_axis_to8(A, 2).astype(compute_dtype)     # pad words masked inside the kernel
    L_c_p, L_q_p, L_a_p = CO_p.shape[2], Q_p.shape[1], A_p.shape[2]

    W_c = params['W_c'].astype(compute_dtype)
    W_q = params['W_q'].astype(compute_dtype)
    W_a = params['W_a'].astype(compute_dtype)
    b_c = params['b_c'].astype(jnp.float32)
    b_q = params['b_q'].astype(jnp.float32)
    b_a = params['b_a'].astype(jnp.float32)

    # --- batch block from a conservative VMEM working-set budget ---
    itemsize = jnp.dtype(compute_dtype).itemsize
    words = N_s * L_c_p + L_q_p + N_a * L_a_p
    per_example = (words * D * itemsize * 2                # double-buffered input blocks
                   + (2 * words * H + (N_s + N_a + 8) * H) * 4)   # f32 intermediates
    cores = _num_tensorcores()
    if batch_block is None:
        BB = _choose_batch_block(B, per_example, vmem_budget_bytes, cores)
    else:
        BB = min(int(batch_block), B)
        if BB < B:
            BB = max(8, (BB // 8) * 8)

    # --- pad the batch axis so it divides the block (sliced off at the end) ---
    cdiv = lambda a, b: -(-a // b)
    B_pad = cdiv(B, BB) * BB
    if B_pad != B:
        padb = lambda x: jnp.pad(x, [(0, B_pad - B)] + [(0, 0)] * (x.ndim - 1))
        CO_p, Q_p, A_p = padb(CO_p), padb(Q_p), padb(A_p)
    grid = (B_pad // BB,)

    kernel = _make_kernel(BB, N_s, L_c_p, L_q_p, N_a, L_a, L_a_p, D, H)

    out = pl.pallas_call(
        kernel,
        out_shape=jax.ShapeDtypeStruct((B_pad, N_a), jnp.float32),
        grid_spec=pltpu.PrefetchScalarGridSpec(
            num_scalar_prefetch=0,
            grid=grid,
            in_specs=[
                pl.BlockSpec((BB, N_s, L_c_p, D), lambda i: (i, 0, 0, 0)),  # context words
                pl.BlockSpec((BB, L_q_p, D),      lambda i: (i, 0, 0)),     # question words
                pl.BlockSpec((BB, N_a, L_a_p, D), lambda i: (i, 0, 0, 0)),  # answer words
                pl.BlockSpec((D, H), lambda i: (0, 0)),                     # W_c
                pl.BlockSpec((D, H), lambda i: (0, 0)),                     # W_q
                pl.BlockSpec((D, H), lambda i: (0, 0)),                     # W_a
                pl.BlockSpec((1, H), lambda i: (0, 0)),                     # b_c
                pl.BlockSpec((1, H), lambda i: (0, 0)),                     # b_q
                pl.BlockSpec((1, H), lambda i: (0, 0)),                     # b_a
            ],
            out_specs=pl.BlockSpec((BB, N_a), lambda i: (i, 0)),
        ),
        compiler_params=pltpu.CompilerParams(
            dimension_semantics=("parallel",),
            vmem_limit_bytes=32 * 1024 * 1024),
    )(CO_p, Q_p, A_p, W_c, W_q, W_a, b_c, b_q, b_a)

    return out[:B]                                                           # (B, N_a)


# ----------------------------- pure-JAX reference -----------------------------
def module_net_reference(CO, Q, A, params):
    c = jnp.tanh(jnp.sum(CO, axis=2) @ params['W_c'] + params['b_c'])          # (B,N_s,H)
    q = jnp.tanh(jnp.sum(Q, axis=1) @ params['W_q'] + params['b_q'])           # (B,H)
    a_enc = jnp.tanh(jnp.einsum('bald,dh->balh', A, params['W_a']) + params['b_a'])
    MA = jnp.sum(a_enc, axis=2)                                                # (B,N_a,H)
    scores = jnp.einsum('bsh,bh->bs', c, q)                                    # (B,N_s)
    attn = jax.nn.softmax(scores, axis=-1)
    o = jnp.einsum('bs,bsh->bh', attn, c)                                      # (B,H)
    conf = jax.nn.sigmoid(jnp.max(scores, axis=-1, keepdims=True))             # (B,1)
    logits = jnp.einsum('bh,bah->ba', o, MA)                                   # (B,N_a)
    p = jax.nn.softmax(logits, axis=-1)
    return conf * p


# ----------------------------- main -----------------------------
if __name__ == "__main__":
    B, N_s, L_c, L_q, N_a, L_a, D, H = 2, 4, 8, 8, 4, 6, 16, 32

    key = jax.random.PRNGKey(0)
    k = jax.random.split(key, 9)
    CO = jax.random.normal(k[0], (B, N_s, L_c, D), jnp.float32)
    Q = jax.random.normal(k[1], (B, L_q, D), jnp.float32)
    A = jax.random.normal(k[2], (B, N_a, L_a, D), jnp.float32)

    params = {
        'W_c': 0.1 * jax.random.normal(k[3], (D, H), jnp.float32),
        'b_c': 0.01 * jax.random.normal(k[4], (1, H), jnp.float32),
        'W_q': 0.1 * jax.random.normal(k[5], (D, H), jnp.float32),
        'b_q': 0.01 * jax.random.normal(k[6], (1, H), jnp.float32),
        'W_a': 0.1 * jax.random.normal(k[7], (D, H), jnp.float32),
        'b_a': 0.01 * jax.random.normal(k[8], (1, H), jnp.float32),
    }

    # default path: bf16 GEMM inputs, f32 accumulation + epilogue
    p_kernel = jax.block_until_ready(module_net_forward(CO, Q, A, params))
    assert p_kernel.shape == (B, N_a)
    assert bool(jnp.all(jnp.isfinite(p_kernel)))

    # Tight check: f32 reference evaluated on the SAME bf16-quantized inputs /
    # weights the kernel consumes (isolates kernel math from the cast budget).
    q16 = lambda x: x.astype(jnp.bfloat16).astype(jnp.float32)
    params_q = dict(params)
    for name in ('W_c', 'W_q', 'W_a'):
        params_q[name] = q16(params[name])
    p_ref_q = jax.block_until_ready(
        module_net_reference(q16(CO), q16(Q), q16(A), params_q))
    assert jnp.allclose(p_kernel, p_ref_q, atol=1e-3, rtol=1e-3), (
        f"kernel vs quantized reference mismatch:\n{p_kernel}\n{p_ref_q}")

    # Loose end-to-end check vs the full-f32 reference: bf16 input-cast budget.
    p_ref = jax.block_until_ready(module_net_reference(CO, Q, A, params))
    assert jnp.allclose(p_kernel, p_ref, atol=2.5e-2, rtol=2.5e-2), (
        f"kernel vs f32 reference mismatch:\n{p_kernel}\n{p_ref}")

    print("KERNEL_OK")
</pallas_src>

<mosaic_0001>
module attributes {stable_mosaic.version = 11 : i64} {
  func.func @kernel(%arg0: i32, %arg1: memref<2x4x8x16xbf16, #tpu.memory_space<vmem>>, %arg2: memref<2x8x16xbf16, #tpu.memory_space<vmem>>, %arg3: memref<2x4x8x16xbf16, #tpu.memory_space<vmem>>, %arg4: memref<16x32xbf16, #tpu.memory_space<vmem>>, %arg5: memref<16x32xbf16, #tpu.memory_space<vmem>>, %arg6: memref<16x32xbf16, #tpu.memory_space<vmem>>, %arg7: memref<1x32xf32, #tpu.memory_space<vmem>>, %arg8: memref<1x32xf32, #tpu.memory_space<vmem>>, %arg9: memref<1x32xf32, #tpu.memory_space<vmem>>, %arg10: memref<2x4xf32, #tpu.memory_space<vmem>>) attributes {dimension_semantics = [#tpu.dimension_semantics<parallel>], iteration_bounds = array<i64: 1>, scalar_prefetch = 0 : i64, scratch_operands = 0 : i64, tpu.core_type = #tpu.core_type<tc>, window_params = [{transform_indices = @transform_0, window_bounds = array<i64: 2, 4, 8, 16>}, {transform_indices = @transform_1, window_bounds = array<i64: 2, 8, 16>}, {transform_indices = @transform_2, window_bounds = array<i64: 2, 4, 8, 16>}, {pipeline_mode = #tpu.pipeline_mode<synchronous>, transform_indices = @transform_3, window_bounds = array<i64: 16, 32>}, {pipeline_mode = #tpu.pipeline_mode<synchronous>, transform_indices = @transform_4, window_bounds = array<i64: 16, 32>}, {pipeline_mode = #tpu.pipeline_mode<synchronous>, transform_indices = @transform_5, window_bounds = array<i64: 16, 32>}, {pipeline_mode = #tpu.pipeline_mode<synchronous>, transform_indices = @transform_6, window_bounds = array<i64: 1, 32>}, {pipeline_mode = #tpu.pipeline_mode<synchronous>, transform_indices = @transform_7, window_bounds = array<i64: 1, 32>}, {pipeline_mode = #tpu.pipeline_mode<synchronous>, transform_indices = @transform_8, window_bounds = array<i64: 1, 32>}, {transform_indices = @transform_9, window_bounds = array<i64: 2, 4>}]} {
    %c0 = arith.constant 0 : index
    %c0_0 = arith.constant 0 : index
    %0 = vector.load %arg7[%c0, %c0_0] : memref<1x32xf32, #tpu.memory_space<vmem>>, vector<1x32xf32>
    %c0_1 = arith.constant 0 : index
    %c0_2 = arith.constant 0 : index
    %1 = vector.load %arg8[%c0_1, %c0_2] : memref<1x32xf32, #tpu.memory_space<vmem>>, vector<1x32xf32>
    %c0_3 = arith.constant 0 : index
    %c0_4 = arith.constant 0 : index
    %2 = vector.load %arg9[%c0_3, %c0_4] : memref<1x32xf32, #tpu.memory_space<vmem>>, vector<1x32xf32>
    %c0_5 = arith.constant 0 : index
    %c0_6 = arith.constant 0 : index
    %c0_7 = arith.constant 0 : index
    %c0_8 = arith.constant 0 : index
    %3 = vector.load %arg1[%c0_5, %c0_6, %c0_7, %c0_8] : memref<2x4x8x16xbf16, #tpu.memory_space<vmem>>, vector<2x4x8x16xbf16>
    %4 = vector.shape_cast %3 : vector<2x4x8x16xbf16> to vector<64x16xbf16>
    %c0_9 = arith.constant 0 : index
    %c0_10 = arith.constant 0 : index
    %5 = vector.load %arg4[%c0_9, %c0_10] : memref<16x32xbf16, #tpu.memory_space<vmem>>, vector<16x32xbf16>
    %cst = arith.constant dense<0.000000e+00> : vector<64x32xf32>
    %6 = tpu.matmul %4, %5, %cst {dimension_numbers = #tpu.dot_dimension_numbers<[1], [0], [0], [1], [0, 0, 1, 1], [], []>} : vector<64x16xbf16>, vector<16x32xbf16>, vector<64x32xf32> -> vector<64x32xf32>
    %7 = vector.shape_cast %6 : vector<64x32xf32> to vector<2x4x8x32xf32>
    %cst_11 = arith.constant dense<0.000000e+00> : vector<2x4x32xf32>
    %8 = vector.multi_reduction <add>, %7, %cst_11 [2] : vector<2x4x8x32xf32> to vector<2x4x32xf32>
    %9 = vector.shape_cast %0 : vector<1x32xf32> to vector<1x1x32xf32>
    %10 = vector.broadcast %9 : vector<1x1x32xf32> to vector<2x4x32xf32>
    %11 = arith.addf %8, %10 : vector<2x4x32xf32>
    %12 = math.tanh %11 : vector<2x4x32xf32>
    %c0_12 = arith.constant 0 : index
    %c0_13 = arith.constant 0 : index
    %c0_14 = arith.constant 0 : index
    %13 = vector.load %arg2[%c0_12, %c0_13, %c0_14] : memref<2x8x16xbf16, #tpu.memory_space<vmem>>, vector<2x8x16xbf16>
    %14 = vector.shape_cast %13 : vector<2x8x16xbf16> to vector<16x16xbf16>
    %c0_15 = arith.constant 0 : index
    %c0_16 = arith.constant 0 : index
    %15 = vector.load %arg5[%c0_15, %c0_16] : memref<16x32xbf16, #tpu.memory_space<vmem>>, vector<16x32xbf16>
    %cst_17 = arith.constant dense<0.000000e+00> : vector<16x32xf32>
    %16 = tpu.matmul %14, %15, %cst_17 {dimension_numbers = #tpu.dot_dimension_numbers<[1], [0], [0], [1], [0, 0, 1, 1], [], []>} : vector<16x16xbf16>, vector<16x32xbf16>, vector<16x32xf32> -> vector<16x32xf32>
    %17 = vector.shape_cast %16 : vector<16x32xf32> to vector<2x8x32xf32>
    %cst_18 = arith.constant dense<0.000000e+00> : vector<2x32xf32>
    %18 = vector.multi_reduction <add>, %17, %cst_18 [1] : vector<2x8x32xf32> to vector<2x32xf32>
    %19 = vector.broadcast %1 : vector<1x32xf32> to vector<2x32xf32>
    %20 = arith.addf %18, %19 : vector<2x32xf32>
    %21 = math.tanh %20 : vector<2x32xf32>
    %c0_19 = arith.constant 0 : index
    %c0_20 = arith.constant 0 : index
    %c0_21 = arith.constant 0 : index
    %c0_22 = arith.constant 0 : index
    %22 = vector.load %arg3[%c0_19, %c0_20, %c0_21, %c0_22] : memref<2x4x8x16xbf16, #tpu.memory_space<vmem>>, vector<2x4x8x16xbf16>
    %23 = vector.shape_cast %22 : vector<2x4x8x16xbf16> to vector<64x16xbf16>
    %c0_23 = arith.constant 0 : index
    %c0_24 = arith.constant 0 : index
    %24 = vector.load %arg6[%c0_23, %c0_24] : memref<16x32xbf16, #tpu.memory_space<vmem>>, vector<16x32xbf16>
    %cst_25 = arith.constant dense<0.000000e+00> : vector<64x32xf32>
    %25 = tpu.matmul %23, %24, %cst_25 {dimension_numbers = #tpu.dot_dimension_numbers<[1], [0], [0], [1], [0, 0, 1, 1], [], []>} : vector<64x16xbf16>, vector<16x32xbf16>, vector<64x32xf32> -> vector<64x32xf32>
    %26 = vector.shape_cast %25 : vector<64x32xf32> to vector<2x4x8x32xf32>
    %27 = vector.shape_cast %2 : vector<1x32xf32> to vector<1x1x1x32xf32>
    %28 = vector.broadcast %27 : vector<1x1x1x32xf32> to vector<2x4x8x32xf32>
    %29 = arith.addf %26, %28 : vector<2x4x8x32xf32>
    %30 = math.tanh %29 : vector<2x4x8x32xf32>
    %31 = tpu.iota {dimensions = array<i32: 0>} : vector<8x32xi32>
    %c6_i32 = arith.constant 6 : i32
    %32 = vector.broadcast %c6_i32 : i32 to vector<8x32xi32>
    %33 = arith.cmpi slt, %31, %32 : vector<8x32xi32>
    %cst_26 = arith.constant 0.000000e+00 : f32
    %34 = vector.shape_cast %33 : vector<8x32xi1> to vector<1x1x8x32xi1>
    %35 = vector.broadcast %34 : vector<1x1x8x32xi1> to vector<2x4x8x32xi1>
    %36 = vector.broadcast %cst_26 : f32 to vector<2x4x8x32xf32>
    %37 = arith.select %35, %30, %36 : vector<2x4x8x32xi1>, vector<2x4x8x32xf32>
    %cst_27 = arith.constant dense<0.000000e+00> : vector<2x4x32xf32>
    %38 = vector.multi_reduction <add>, %37, %cst_27 [2] : vector<2x4x8x32xf32> to vector<2x4x32xf32>
    %39 = vector.shape_cast %21 : vector<2x32xf32> to vector<2x1x32xf32>
    %40 = vector.broadcast %39 : vector<2x1x32xf32> to vector<2x4x32xf32>
    %41 = arith.mulf %12, %40 : vector<2x4x32xf32>
    %cst_28 = arith.constant dense<0.000000e+00> : vector<2x4xf32>
    %42 = vector.multi_reduction <add>, %41, %cst_28 [2] : vector<2x4x32xf32> to vector<2x4xf32>
    %cst_29 = arith.constant dense<0xFF800000> : vector<2xf32>
    %43 = vector.multi_reduction <maximumf>, %42, %cst_29 [1] : vector<2x4xf32> to vector<2xf32>
    %44 = vector.shape_cast %43 : vector<2xf32> to vector<2x1xf32>
    %45 = vector.broadcast %44 : vector<2x1xf32> to vector<2x4xf32>
    %46 = arith.subf %42, %45 : vector<2x4xf32>
    %47 = math.exp %46 : vector<2x4xf32>
    %cst_30 = arith.constant dense<0.000000e+00> : vector<2xf32>
    %48 = vector.multi_reduction <add>, %47, %cst_30 [1] : vector<2x4xf32> to vector<2xf32>
    %49 = vector.shape_cast %48 : vector<2xf32> to vector<2x1xf32>
    %50 = vector.broadcast %49 : vector<2x1xf32> to vector<2x4xf32>
    %51 = arith.divf %47, %50 : vector<2x4xf32>
    %52 = vector.shape_cast %51 : vector<2x4xf32> to vector<2x4x1xf32>
    %53 = vector.broadcast %52 : vector<2x4x1xf32> to vector<2x4x32xf32>
    %54 = arith.mulf %53, %12 : vector<2x4x32xf32>
    %cst_31 = arith.constant dense<0.000000e+00> : vector<2x32xf32>
    %55 = vector.multi_reduction <add>, %54, %cst_31 [1] : vector<2x4x32xf32> to vector<2x32xf32>
    %56 = arith.negf %44 : vector<2x1xf32>
    %57 = math.exp %56 : vector<2x1xf32>
    %cst_32 = arith.constant 1.000000e+00 : f32
    %58 = vector.broadcast %cst_32 : f32 to vector<2x1xf32>
    %59 = arith.addf %58, %57 : vector<2x1xf32>
    %60 = arith.divf %58, %59 : vector<2x1xf32>
    %61 = vector.shape_cast %55 : vector<2x32xf32> to vector<2x1x32xf32>
    %62 = vector.broadcast %61 : vector<2x1x32xf32> to vector<2x4x32xf32>
    %63 = arith.mulf %62, %38 : vector<2x4x32xf32>
    %cst_33 = arith.constant dense<0.000000e+00> : vector<2x4xf32>
    %64 = vector.multi_reduction <add>, %63, %cst_33 [2] : vector<2x4x32xf32> to vector<2x4xf32>
    %cst_34 = arith.constant dense<0xFF800000> : vector<2xf32>
    %65 = vector.multi_reduction <maximumf>, %64, %cst_34 [1] : vector<2x4xf32> to vector<2xf32>
    %66 = vector.shape_cast %65 : vector<2xf32> to vector<2x1xf32>
    %67 = vector.broadcast %66 : vector<2x1xf32> to vector<2x4xf32>
    %68 = arith.subf %64, %67 : vector<2x4xf32>
    %69 = math.exp %68 : vector<2x4xf32>
    %cst_35 = arith.constant dense<0.000000e+00> : vector<2xf32>
    %70 = vector.multi_reduction <add>, %69, %cst_35 [1] : vector<2x4xf32> to vector<2xf32>
    %71 = vector.shape_cast %70 : vector<2xf32> to vector<2x1xf32>
    %72 = vector.broadcast %71 : vector<2x1xf32> to vector<2x4xf32>
    %73 = arith.divf %69, %72 : vector<2x4xf32>
    %74 = vector.broadcast %60 : vector<2x1xf32> to vector<2x4xf32>
    %75 = arith.mulf %74, %73 : vector<2x4xf32>
    %c0_36 = arith.constant 0 : index
    %c0_37 = arith.constant 0 : index
    %76 = vector.load %arg10[%c0_36, %c0_37] : memref<2x4xf32, #tpu.memory_space<vmem>>, vector<2x4xf32>
    tpu.vector_store %arg10[%c0_36, %c0_37], %75 {strides = array<i32>} : memref<2x4xf32, #tpu.memory_space<vmem>>, vector<2x4xf32>,
    return
  }
  func.func @transform_0(%arg0: i32) -> (i32, i32, i32, i32) {
    %c0_i32 = arith.constant 0 : i32
    %c0_i32_0 = arith.constant 0 : i32
    %c0_i32_1 = arith.constant 0 : i32
    %c0_i32_2 = arith.constant 0 : i32
    return %arg0, %c0_i32, %c0_i32_0, %c0_i32_1 : i32, i32, i32, i32
  }
  func.func @transform_1(%arg0: i32) -> (i32, i32, i32) {
    %c0_i32 = arith.constant 0 : i32
    %c0_i32_0 = arith.constant 0 : i32
    %c0_i32_1 = arith.constant 0 : i32
    return %arg0, %c0_i32, %c0_i32_0 : i32, i32, i32
  }
  func.func @transform_2(%arg0: i32) -> (i32, i32, i32, i32) {
    %c0_i32 = arith.constant 0 : i32
    %c0_i32_0 = arith.constant 0 : i32
    %c0_i32_1 = arith.constant 0 : i32
    %c0_i32_2 = arith.constant 0 : i32
    return %arg0, %c0_i32, %c0_i32_0, %c0_i32_1 : i32, i32, i32, i32
  }
  func.func @transform_3(%arg0: i32) -> (i32, i32) {
    %c0_i32 = arith.constant 0 : i32
    %c0_i32_0 = arith.constant 0 : i32
    %c0_i32_1 = arith.constant 0 : i32
    return %c0_i32, %c0_i32_0 : i32, i32
  }
  func.func @transform_4(%arg0: i32) -> (i32, i32) {
    %c0_i32 = arith.constant 0 : i32
    %c0_i32_0 = arith.constant 0 : i32
    %c0_i32_1 = arith.constant 0 : i32
    return %c0_i32, %c0_i32_0 : i32, i32
  }
  func.func @transform_5(%arg0: i32) -> (i32, i32) {
    %c0_i32 = arith.constant 0 : i32
    %c0_i32_0 = arith.constant 0 : i32
    %c0_i32_1 = arith.constant 0 : i32
    return %c0_i32, %c0_i32_0 : i32, i32
  }
  func.func @transform_6(%arg0: i32) -> (i32, i32) {
    %c0_i32 = arith.constant 0 : i32
    %c0_i32_0 = arith.constant 0 : i32
    %c0_i32_1 = arith.constant 0 : i32
    return %c0_i32, %c0_i32_0 : i32, i32
  }
  func.func @transform_7(%arg0: i32) -> (i32, i32) {
    %c0_i32 = arith.constant 0 : i32
    %c0_i32_0 = arith.constant 0 : i32
    %c0_i32_1 = arith.constant 0 : i32
    return %c0_i32, %c0_i32_0 : i32, i32
  }
  func.func @transform_8(%arg0: i32) -> (i32, i32) {
    %c0_i32 = arith.constant 0 : i32
    %c0_i32_0 = arith.constant 0 : i32
    %c0_i32_1 = arith.constant 0 : i32
    return %c0_i32, %c0_i32_0 : i32, i32
  }
  func.func @transform_9(%arg0: i32) -> (i32, i32) {
    %c0_i32 = arith.constant 0 : i32
    %c0_i32_0 = arith.constant 0 : i32
    return %arg0, %c0_i32 : i32, i32
  }
}

</mosaic_0001>

<bundles_post_ra>
// kernel: tpu_custom_call.1
= control target key start
LH: loop header
LB: loop body
LE: loop exit
PB: predicated region body
PF: predicated region fallthrough
CT: control target
= control target key end

     0   :  { %14 = vsyncpa [#allocation3], 0  ;;  %s1387_s0 = inlined_call_operand.hbm [shape: bf16[2,4,8,16], index: 0, kind: input, shape index: {}]   ;;  %s1388_s1 = inlined_call_operand.hbm [shape: bf16[2,8,16], index: 1, kind: input, shape index: {}]   ;;  %s1389_s2 = inlined_call_operand.hbm [shape: bf16[2,4,8,16], index: 2, kind: input, shape index: {}]   ;;  %s1390_s3 = inlined_call_operand.hbm [shape: bf16[16,32], index: 3, kind: input, shape index: {}]   ;;  %s1391_s4 = inlined_call_operand.hbm [shape: bf16[16,32], index: 4, kind: input, shape index: {}]   ;;  %s1392_s5 = inlined_call_operand.vmem [shape: bf16[16,32], index: 5, kind: input, shape index: {}]   ;;  %s1393_s6 = inlined_call_operand.vmem [shape: f32[1,32], index: 6, kind: input, shape index: {}]   ;;  %s1394_s7 = inlined_call_operand.vmem [shape: f32[1,32], index: 7, kind: input, shape index: {}]   ;;  %s1395_s8 = inlined_call_operand.vmem [shape: f32[1,32], index: 8, kind: input, shape index: {}]   ;;  %s1396_s9 = inlined_call_operand.hbm [shape: f32[2,4], index: 9, kind: output, shape index: {}]  }
   0x1   :  { %15 = vsyncpa [#allocation6], 0 }
   0x2   :  { %16 = vsyncpa [#allocation9], 0 }
   0x3   :  { %17 = vsyncpa [#allocation4], 0  ;;  %s1159_s30 = smov [#allocation5]   ;;  %s1160_s11 = smov [#allocation8]  }
   0x4   :  { %s35_s10 = sshll.u32 %s1159_s30, 4  ;;  %s59_s12 = sshll.u32 %s1160_s11, 4  ;;  %s36_s10 = int_to_ptr.vmem [resolvable:$true] %s35_s10  ;;  %s60_s12 = int_to_ptr.vmem [resolvable:$true] %s59_s12 }
   0x5   :  { %s1039_s13 = scalar_lea.vmem %s36_s10, 128  ;;  %p1044_p1 = scmp.lt.s32.totalorder %s36_s10, %s36_s10 }
   0x6   :  { %p1040_p0 = scmp.ne.s32.totalorder %s36_s10, %s1039_s13  ;;  %p1045_p2 = scmp.lt.s32.totalorder %s1039_s13, %s1039_s13 }
   0x8   :  { %p1046_p3 = por %p1045_p2, %p1044_p1 }
   0xa   :  { %p1047_p4 = pnand %p1046_p3, %p1040_p0 }
   0xc   :  { %1050 = shalt.err (!%p1047_p4)
}
   0xd   :  { %s1161_s14 = smov 64   ;;  %s1162_s15 = smov 4  }
   0xe   :  { %41 = dma.hbm_to_vmem [thread:$0]  %s1388_s1, 128, %s36_s10, [#allocation6], %s1161_s14, %s1161_s14, %s1162_s15  }
   0xf   :  { %s1059_s18 = scalar_lea.vmem %s60_s12, 128  ;;  %p1064_p6 = scmp.lt.s32.totalorder %s60_s12, %s60_s12 }
  0x10   :  { %p1060_p5 = scmp.ne.s32.totalorder %s60_s12, %s1059_s18  ;;  %p1065_p7 = scmp.lt.s32.totalorder %s1059_s18, %s1059_s18 }
  0x12   :  { %p1066_p8 = por %p1065_p7, %p1064_p6 }
  0x14   :  { %p1067_p9 = pnand %p1066_p8, %p1060_p5 }
  0x16   :  { %1070 = shalt.err (!%p1067_p9)
}
  0x17   :  { %65 = dma.hbm_to_vmem [thread:$0]  %s1390_s3, 128, %s60_s12, [#allocation9], %s1161_s14, %s1161_s14, %s1162_s15  }
  0x18   :  { %s1163_s21 = smov [#allocation2]   ;;  %s1164_s23 = smov [#allocation7]  }
  0x19   :  { %s23_s22 = sshll.u32 %s1163_s21, 4  ;;  %s47_s24 = sshll.u32 %s1164_s23, 4  ;;  %s24_s22 = int_to_ptr.vmem [resolvable:$true] %s23_s22  ;;  %s48_s24 = int_to_ptr.vmem [resolvable:$true] %s47_s24 }
  0x1a   :  { %s1079_s1 = scalar_lea.vmem %s24_s22, 512  ;;  %p1084_p11 = scmp.lt.s32.totalorder %s24_s22, %s24_s22 }
  0x1b   :  { %p1080_p10 = scmp.ne.s32.totalorder %s24_s22, %s1079_s1  ;;  %p1085_p12 = scmp.lt.s32.totalorder %s1079_s1, %s1079_s1 }
  0x1d   :  { %p1086_p13 = por %p1085_p12, %p1084_p11 }
  0x1f   :  { %p1087_p0 = pnand %p1086_p13, %p1080_p10 }
  0x21   :  { %1090 = shalt.err (!%p1087_p0)
}
  0x22   :  { %29 = dma.hbm_to_vmem [thread:$0]  %s1387_s0, 512, %s24_s22, [#allocation3], %s1161_s14, %s1161_s14, %s1162_s15  }
  0x23   :  { %s1099_s3 = scalar_lea.vmem %s48_s24, 512  ;;  %p1104_p2 = scmp.lt.s32.totalorder %s48_s24, %s48_s24 }
  0x24   :  { %p1100_p1 = scmp.ne.s32.totalorder %s48_s24, %s1099_s3  ;;  %p1105_p3 = scmp.lt.s32.totalorder %s1099_s3, %s1099_s3 }
  0x26   :  { %p1106_p4 = por %p1105_p3, %p1104_p2 }
  0x28   :  { %p1107_p5 = pnand %p1106_p4, %p1100_p1 }
  0x2a   :  { %1110 = shalt.err (!%p1107_p5)
}
  0x2b   :  { %53 = dma.hbm_to_vmem [thread:$0]  %s1389_s2, 512, %s48_s24, [#allocation6], %s1161_s14, %s1161_s14, %s1162_s15  }
  0x2c   :  { %s1165_s29 = smov [#allocation10]  }
  0x2d   :  { %s71_s30 = sshll.u32 %s1165_s29, 4  ;;  %s72_s30 = int_to_ptr.vmem [resolvable:$true] %s71_s30 }
  0x2e   :  { %s1119_s10 = scalar_lea.vmem %s72_s30, 128  ;;  %p1124_p7 = scmp.lt.s32.totalorder %s72_s30, %s72_s30 }
  0x2f   :  { %p1120_p6 = scmp.ne.s32.totalorder %s72_s30, %s1119_s10  ;;  %p1125_p8 = scmp.lt.s32.totalorder %s1119_s10, %s1119_s10 }
  0x31   :  { %p1126_p9 = por %p1125_p8, %p1124_p7 }
  0x33   :  { %p1127_p10 = pnand %p1126_p9, %p1120_p6 }
  0x35   :  { %1130 = shalt.err (!%p1127_p10)
}
  0x36   :  { %77 = dma.hbm_to_vmem [thread:$0]  %s1391_s4, 128, %s72_s30, [#allocation9], %s1161_s14, %s1161_s14, %s1162_s15  }
  0x37   :  { %1151 = dma.done.wait [#allocation3], 512  }
  0x38   :  { %1152 = vsyncadd [#allocation3], 4294966784 }
  0x39   :  { %1153 = dma.done.wait [#allocation6], 640  }
  0x3a   :  { %1154 = vsyncadd [#allocation6], 4294966656 }
  0x3b   :  { %1155 = dma.done.wait [#allocation9], 256  }
  0x3c   :  { %1156 = vsyncadd [#allocation9], 4294967040  ;;  %v1166_v0 = vmov 0.0   ;;  %vm1167_vm0 = vmmov 0   ;;  %v963_v1 = vld [vmem:[#allocation8] sm:$0xff]   ;;  %v964_v2 = vld [vmem:[#allocation10] sm:$0xff]  }
  0x3d   :  { %934 = vmatprep.subr.bf16.mxu1 %v1166_v0  ;;  %936 = vmatprep.mubr.msk.bf16.mxu1 %vm1167_vm0, %v1166_v0  ;;  %vm141_vm1 = vcmask 130048   ;;  %v965_v3 = vld [vmem:[#allocation2] sm:$0xff]   ;;  %v967_v5 = vld [vmem:[#allocation2 + $0x8] sm:$0xff]   ;;  %v968_v6 = vld [vmem:[#allocation2 + $0x10] sm:$0xff]   ;;  %vm219_vm2 = vcmask 261120   ;;  %vm610_vm3 = vcmask 1041409  }
  0x3e   :  { %924 = vmatprep.subr.bf16.mxu0 %v963_v1  ;;  %935 = vmatpush3.bf16.msra.mxu1 %v964_v2  ;;  %v966_v4 = vld [vmem:[#allocation5] sm:$0xff]   ;;  %v969_v7 = vld [vmem:[#allocation2 + $0x18] sm:$0xff]   ;;  %vm613_vm4 = vcmask 1042434   ;;  %vm616_vm5 = vcmask 1043459   ;;  %vm626_vm6 = vcmask 257024   ;;  %vm647_vm7 = vcmask 25600  }
  0x3f   :  { %925 = vmatpush3.bf16.msra.mxu0 %v963_v1  ;;  %926 = vmatprep.mubr.msk.bf16.mxu0 %vm141_vm1, %v965_v3  ;;  %v900_v45 = vld [vmem:[%s1394_s7] ss:$0 sm:$0xff] }
  0x40   :  { %v896_v55 = vld [vmem:[%s1393_s6] ss:$0 sm:$0xff] }
  0x41   :  { %937 = vmatmul.mubr.msk.bf16.vlgmr.msra.gmra.mxu1 %vm141_vm1, %v966_v4 }
  0x42   :  { %927 = vmatmul.mubr.msk.bf16.vlgmr.msra.gmra.mxu0 %vm141_vm1, %v967_v5 }
  0x43   :  { %930 = vmatprep.mubr.msk.bf16.mxu0 %vm141_vm1, %v968_v6 }
  0x4a   :  { %931 = vmatmul.mubr.msk.bf16.gmra.mxu0 %vm141_vm1, %v969_v7 }
 0x101   :  { %v350_v8 = vpop.f32.mrf.mxu1 }
 0x102   :  { %v928_v9 = vpop.f32.mrf.mxu0  ;;  %v357_v10 = vsel %vm219_vm2, %v350_v8, 0.0 }
 0x103   :  { %v234_v11 = vsel %vm219_vm2, %v928_v9, 0.0  ;;  %v358_v12 = vrot.slane %v357_v10, 4  ;;  %v938_v14 = vpop.f32.mrf.mxu1 }
 0x104   :  { %v235_v13 = vrot.slane %v234_v11, 4  ;;  %v188_v15 = vpop.f32.mrf.mxu0 }
 0x105   :  { %v220_v16 = vsel %vm219_vm2, %v188_v15, 0.0  ;;  %v359_v17 = vadd.f32 %v358_v12, %v357_v10  ;;  %v353_v20 = vpop.f32.mrf.mxu1  ;;  %v516_v12 = vlaneseq }
 0x106   :  { %v236_v18 = vadd.f32 %v235_v13, %v234_v11  ;;  %v221_v19 = vrot.slane %v220_v16, 4  ;;  %v929_v21 = vpop.f32.mrf.mxu0  ;;  %v364_v22 = vsel %vm219_vm2, %v353_v20, 0.0 }
 0x107   :  { %v241_v23 = vsel %vm219_vm2, %v929_v21, 0.0  ;;  %v360_v24 = vrot.slane %v359_v17, 2  ;;  %v365_v27 = vrot.slane %v364_v22, 4  ;;  %v939_v29 = vpop.f32.mrf.mxu1 }
 0x108   :  { %v237_v25 = vrot.slane %v236_v18, 2  ;;  %v222_v26 = vadd.f32 %v221_v19, %v220_v16  ;;  %v191_v28 = vpop.f32.mrf.mxu0  ;;  %v242_v30 = vrot.slane %v241_v23, 4 }
 0x109   :  { %v227_v31 = vsel %vm219_vm2, %v191_v28, 0.0  ;;  %v361_v32 = vadd.f32 %v360_v24, %v359_v17  ;;  %v366_v35 = vadd.f32 %v365_v27, %v364_v22  ;;  %v1272_v28 = vshrl.u32 %v516_v12, 7 }
 0x10a   :  { %v238_v33 = vadd.f32 %v237_v25, %v236_v18  ;;  %v223_v34 = vrot.slane %v222_v26, 2  ;;  %v932_v36 = vpop.f32.mrf.mxu0  ;;  %v243_v37 = vadd.f32 %v242_v30, %v241_v23  ;;  %v228_v38 = vrot.slane %v227_v31, 4 }
 0x10b   :  { %v262_v39 = vsel %vm219_vm2, %v932_v36, 0.0  ;;  %v362_v40 = vrot.slane %v361_v32, 1  ;;  %v367_v43 = vrot.slane %v366_v35, 2  ;;  %v1275_v36 = vsub.s32 0, %v1272_v28 }
 0x10c   :  { %v239_v41 = vrot.slane %v238_v33, 1  ;;  %v224_v42 = vadd.f32 %v223_v34, %v222_v26  ;;  %v204_v44 = vpop.f32.mrf.mxu0  ;;  %v244_v46 = vrot.slane %v243_v37, 2  ;;  %v229_v47 = vadd.f32 %v228_v38, %v227_v31 }
 0x10d   :  { %v263_v48 = vrot.slane %v262_v39, 4  ;;  %v248_v49 = vsel %vm219_vm2, %v204_v44, 0.0  ;;  %v363_v50 = vadd.f32 %v362_v40, %v361_v32  ;;  %v368_v53 = vadd.f32 %v367_v43, %v366_v35 }
 0x10e   :  { %v240_v51 = vadd.f32 %v239_v41, %v238_v33  ;;  %v225_v52 = vrot.slane %v224_v42, 1  ;;  %v933_v54 = vpop.f32.mrf.mxu0  ;;  %v245_v56 = vadd.f32 %v244_v46, %v243_v37  ;;  %v230_v57 = vrot.slane %v229_v47, 2 }
 0x10f   :  { %v264_v58 = vadd.f32 %v263_v48, %v262_v39  ;;  %v249_v59 = vrot.slane %v248_v49, 4  ;;  %v377_v60 = vadd.f32 %v900_v45, %v363_v50  ;;  %v269_v3 = vsel %vm219_vm2, %v933_v54, 0.0 }
 0x110   :  { %v226_v61 = vadd.f32 %v225_v52, %v224_v42  ;;  %v246_v62 = vrot.slane %v245_v56, 1  ;;  %v231_v63 = vadd.f32 %v230_v57, %v229_v47  ;;  %v284_v2 = vadd.f32 %v896_v55, %v240_v51  ;;  %v207_v4 = vpop.f32.mrf.mxu0 }
 0x111   :  { %v265_v0 = vrot.slane %v264_v58, 2  ;;  %v250_v1 = vadd.f32 %v249_v59, %v248_v49  ;;  %975 = vtanh.f32 %v377_v60  ;;  %v369_v5 = vrot.slane %v368_v53, 1 }
 0x112   :  { %v247_v6 = vadd.f32 %v246_v62, %v245_v56  ;;  %v232_v7 = vrot.slane %v231_v63, 1  ;;  %v282_v9 = vadd.f32 %v896_v55, %v226_v61  ;;  %v270_v11 = vrot.slane %v269_v3, 4 }
 0x113   :  { %v266_v8 = vadd.f32 %v265_v0, %v264_v58  ;;  %v251_v10 = vrot.slane %v250_v1, 2  ;;  %v255_v16 = vsel %vm219_vm2, %v207_v4, 0.0  ;;  %977 = vtanh.f32 %v284_v2 }
 0x114   :  { %v285_v13 = vadd.f32 %v896_v55, %v247_v6  ;;  %v233_v14 = vadd.f32 %v232_v7, %v231_v63  ;;  %v271_v18 = vadd.f32 %v270_v11, %v269_v3  ;;  %v256_v19 = vrot.slane %v255_v16, 4 }
 0x115   :  { %v267_v15 = vrot.slane %v266_v8, 1  ;;  %v252_v17 = vadd.f32 %v251_v10, %v250_v1  ;;  %v370_v20 = vadd.f32 %v369_v5, %v368_v53  ;;  %vm518_vm8 = vcmp.lt.s32.totalorder %v1272_v28, 6 }
 0x116   :  { %979 = vtanh.f32 %v285_v13  ;;  %v283_v21 = vadd.f32 %v896_v55, %v233_v14  ;;  %v272_v23 = vrot.slane %v271_v18, 2  ;;  %v257_v24 = vadd.f32 %v256_v19, %v255_v16 }
 0x117   :  { %981 = vtanh.f32 %v282_v9  ;;  %v253_v22 = vrot.slane %v252_v17, 1  ;;  %v268_v25 = vadd.f32 %v267_v15, %v266_v8  ;;  %v378_v29 = vadd.f32 %v900_v45, %v370_v20 }
 0x118   :  { %983 = vtanh.f32 %v283_v21  ;;  %v273_v26 = vadd.f32 %v272_v23, %v271_v18  ;;  %v258_v27 = vrot.slane %v257_v24, 2 }
 0x119   :  { %v254_v30 = vadd.f32 %v253_v22, %v252_v17  ;;  %v288_v33 = vadd.f32 %v896_v55, %v268_v25  ;;  %985 = vtanh.f32 %v378_v29 }
 0x11a   :  { %v274_v31 = vrot.slane %v273_v26, 1  ;;  %v259_v32 = vadd.f32 %v258_v27, %v257_v24  ;;  %v636_v24 = vand.u32 127, %v516_v12  ;;  %v1306_v12 = vsub.s32 1, %v1272_v28 }
 0x11b   :  { %v286_v38 = vadd.f32 %v896_v55, %v254_v30  ;;  %987 = vtanh.f32 %v288_v33  ;;  %v1168_v33 = vmov 0  }
 0x11c   :  { %v275_v34 = vadd.f32 %v274_v31, %v273_v26  ;;  %v260_v35 = vrot.slane %v259_v32, 1  ;;  %v1299_v26 = vsub.s32 %v636_v24, %v1272_v28  ;;  %962 = vset.pattern.permute.xlu0 %v1168_v33  ;;  %961 = vset.pattern.permute.xlu1 %v1168_v33 }
 0x11e   :  { %v976_v37 = vpop.eup %975  ;;  %v289_v39 = vadd.f32 %v896_v55, %v275_v34  ;;  %v261_v40 = vadd.f32 %v260_v35, %v259_v32 }
 0x11f   :  { %v588_v42 = vrot.slane %v976_v37, %v1275_v36 }
 0x120   :  { %989 = vtanh.f32 %v289_v39  ;;  %v287_v41 = vadd.f32 %v896_v55, %v261_v40  ;;  %v978_v43 = vpop.eup %977 }
 0x121   :  { %991 = vtanh.f32 %v286_v38  ;;  %v595_v47 = vmul.f32 %v978_v43, %v588_v42  ;;  %v724_v51 = vrot.slane %v978_v43, 6 }
 0x122   :  { %993 = vtanh.f32 %v287_v41 }
 0x123   :  { %v980_v44 = vpop.eup %979  ;;  %v612_v56 = vrot.slane %v595_v47, 6  ;;  %v973_v47 = vld [vmem:[#allocation7 + $0x10] sm:$0xff]  }
 0x124   :  { %v982_v45 = vpop.eup %981  ;;  %v596_v49 = vmul.f32 %v980_v44, %v588_v42  ;;  %v726_v55 = vrot.slane %v980_v44, 5  ;;  %v970_v44 = vld [vmem:[%s1392_s5] sm:$0xff]  }
 0x125   :  { %v984_v46 = vpop.eup %983  ;;  %v593_v52 = vmul.f32 %v982_v45, %v588_v42  ;;  %940 = vmatprep.subr.bf16.mxu1 %v970_v44 }
 0x126   :  { %v594_v48 = vmul.f32 %v984_v46, %v588_v42  ;;  %v722_v50 = vrot.slane %v984_v46, 7  ;;  %v615_v59 = vrot.slane %v596_v49, 5  ;;  %v986_v61 = vpop.eup %985  ;;  %v972_v46 = vld [vmem:[#allocation7 + $0x8] sm:$0xff]   ;;  %941 = vmatpush3.bf16.msra.mxu1 %v970_v44 }
 0x127   :  { %v592_v3 = vrot.slane %v986_v61, %v1275_v36 }
 0x128   :  { %v609_v53 = vrot.slane %v594_v48, 7  ;;  %v723_v54 = vsel %vm610_vm3, %v722_v50, %v982_v45  ;;  %v988_v0 = vpop.eup %987  ;;  %v971_v45 = vld [vmem:[#allocation7] sm:$0xff]   ;;  %v974_v48 = vld [vmem:[#allocation7 + $0x18] sm:$0xff]  }
 0x129   :  { %v725_v57 = vsel %vm613_vm4, %v724_v51, %v723_v54  ;;  %v599_v6 = vmul.f32 %v988_v0, %v592_v3  ;;  %v730_v10 = vrot.slane %v988_v0, 6  ;;  %942 = vmatprep.mubr.msk.bf16.mxu1 %vm141_vm1, %v971_v45 }
 0x12a   :  { %v611_v58 = vsel %vm610_vm3, %v609_v53, %v593_v52  ;;  %v1282_v60 = vsel %vm616_vm5, %v726_v55, %v725_v57  ;;  %943 = vmatmul.mubr.msk.bf16.vlgmr.msra.gmra.mxu1 %vm141_vm1, %v972_v46 }
 0x12b   :  { %v614_v62 = vsel %vm613_vm4, %v612_v56, %v611_v58  ;;  %v620_v16 = vrot.slane %v599_v6, 6  ;;  %946 = vmatprep.mubr.msk.bf16.mxu1 %vm141_vm1, %v973_v47 }
 0x12c   :  { %v617_v63 = vsel %vm616_vm5, %v615_v59, %v614_v62 }
 0x12d   :  { %v627_v1 = vsel %vm626_vm6, %v617_v63, 0.0  ;;  %v990_v2 = vpop.eup %989 }
 0x12e   :  { %628 = vadd.xlane.f32.xlu0 %v627_v1  ;;  %v992_v4 = vpop.eup %991  ;;  %v600_v8 = vmul.f32 %v990_v2, %v592_v3  ;;  %v732_v15 = vrot.slane %v990_v2, 5 }
 0x12f   :  { %v994_v5 = vpop.eup %993  ;;  %v597_v11 = vmul.f32 %v992_v4, %v592_v3 }
 0x130   :  { %v598_v7 = vmul.f32 %v994_v5, %v592_v3  ;;  %v728_v9 = vrot.slane %v994_v5, 7  ;;  %v622_v19 = vrot.slane %v600_v8, 5  ;;  %v910_v5 = vld [vmem:[%s1395_s8] ss:$0 sm:$0xff]  ;;  %s1169_s8 = smov [#allocation11]  }
 0x131   :  { %s876_s15 = sshll.u32 %s1169_s8, 4  ;;  %s877_s15 = int_to_ptr.vmem [resolvable:$true] %s876_s15 }
 0x132   :  { %v618_v13 = vrot.slane %v598_v7, 7  ;;  %v729_v14 = vsel %vm610_vm3, %v728_v9, %v992_v4  ;;  %947 = vmatmul.mubr.msk.bf16.gmra.mxu1 %vm141_vm1, %v974_v48  ;;  %s1131_s16 = scalar_lea.vmem %s877_s15, 32  ;;  %p1136_p12 = scmp.lt.s32.totalorder %s877_s15, %s877_s15 }
 0x133   :  { %v731_v17 = vsel %vm613_vm4, %v730_v10, %v729_v14  ;;  %p1132_p11 = scmp.ne.s32.totalorder %s877_s15, %s1131_s16  ;;  %p1137_p13 = scmp.lt.s32.totalorder %s1131_s16, %s1131_s16 }
 0x134   :  { %v619_v18 = vsel %vm610_vm3, %v618_v13, %v597_v11  ;;  %v1292_v20 = vsel %vm616_vm5, %v732_v15, %v731_v17 }
 0x135   :  { %v621_v21 = vsel %vm613_vm4, %v620_v16, %v619_v18  ;;  %p1138_p0 = por %p1137_p13, %p1136_p12 }
 0x136   :  { %v623_v22 = vsel %vm616_vm5, %v622_v19, %v621_v21 }
 0x137   :  { %v630_v23 = vsel %vm626_vm6, %v623_v22, 0.0  ;;  %p1139_p1 = pnand %p1138_p0, %p1132_p11 }
 0x138   :  { %631 = vadd.xlane.f32.xlu0 %v630_v23 }
 0x1b7   :  { %v629_v25 = vpop.xlane.xlu0 %628 }
 0x1b8   :  { %v640_v29 = vrot.slane %v629_v25, %v1299_v26 }
 0x1c1   :  { %v632_v27 = vpop.xlane.xlu0 %631 }
 0x1c2   :  { %v644_v30 = vrot.slane %v632_v27, %v1299_v26 }
 0x1c4   :  { %v645_v31 = vsel %vm610_vm3, %v644_v30, %v640_v29 }
 0x1c5   :  { %v648_v32 = vsel %vm647_vm7, %v645_v31, -inf }
 0x1c6   :  { %649 = vmax.xlane.f32.xlu1 %v648_v32 }
 0x1ea   :  { %v944_v63 = vpop.f32.mrf.mxu1 }
 0x1eb   :  { %v502_v10 = vadd.f32 %v944_v63, %v910_v5 }
 0x1ec   :  { %v463_v0 = vpop.f32.mrf.mxu1 }
 0x1ed   :  { %v500_v7 = vadd.f32 %v910_v5, %v463_v0 }
 0x1ee   :  { %v945_v1 = vpop.f32.mrf.mxu1 }
 0x1ef   :  { %v503_v14 = vadd.f32 %v945_v1, %v910_v5 }
 0x1f0   :  { %v466_v2 = vpop.f32.mrf.mxu1 }
 0x1f1   :  { %v501_v8 = vadd.f32 %v910_v5, %v466_v2 }
 0x1f2   :  { %v948_v3 = vpop.f32.mrf.mxu1 }
 0x1f3   :  { %v506_v15 = vadd.f32 %v948_v3, %v910_v5 }
 0x1f4   :  { %v479_v4 = vpop.f32.mrf.mxu1 }
 0x1f5   :  { %v504_v11 = vadd.f32 %v910_v5, %v479_v4 }
 0x1f6   :  { %v949_v6 = vpop.f32.mrf.mxu1 }
 0x1f7   :  { %v507_v16 = vadd.f32 %v949_v6, %v910_v5 }
 0x1f8   :  { %v482_v9 = vpop.f32.mrf.mxu1 }
 0x1f9   :  { %v505_v13 = vadd.f32 %v910_v5, %v482_v9 }
 0x24f   :  { %v1308_v34 = vpop.xlane.xlu1 %649 }
 0x250   :  { %v655_v35 = vrot.slane %v1308_v34, %v1275_v36  ;;  %v659_v37 = vrot.slane %v1308_v34, %v1306_v12 }
 0x252   :  { %v662_v38 = vsub.f32 %v629_v25, %v655_v35  ;;  %v663_v39 = vsub.f32 %v632_v27, %v659_v37 }
 0x254   :  { %v664_v40 = vmul.f32 1.442695, %v662_v38  ;;  %v666_v41 = vmul.f32 1.442695, %v663_v39 }
 0x256   :  { %995 = vpow2.f32 %v664_v40 }
 0x257   :  { %997 = vpow2.f32 %v666_v41 }
 0x263   :  { %v996_v42 = vpop.eup %995 }
 0x264   :  { %v998_v43 = vpop.eup %997  ;;  %671 = vperm.xlu1 %961, %v996_v42  }
 0x265   :  { %674 = vperm.xlu0 %962, %v998_v43  }
 0x2df   :  { %v672_v49 = vpop.permute.xlu1 %671 }
 0x2e0   :  { %v675_v50 = vpop.permute.xlu0 %674  ;;  %v679_v51 = vrot.slane %v672_v49, %v1299_v26 }
 0x2e1   :  { %v683_v52 = vrot.slane %v675_v50, %v1299_v26 }
 0x2e3   :  { %v684_v53 = vsel %vm610_vm3, %v683_v52, %v679_v51 }
 0x2e4   :  { %v686_v54 = vsel %vm647_vm7, %v684_v53, 0.0 }
 0x2e5   :  { %687 = vadd.xlane.f32.xlu1 %v686_v54 }
 0x36e   :  { %v688_v55 = vpop.xlane.xlu1 %687 }
 0x36f   :  { %v693_v56 = vrot.slane %v688_v55, %v1275_v36  ;;  %v697_v57 = vrot.slane %v688_v55, %v1306_v12 }
 0x371   :  { %999 = vrcp.f32 %v693_v56 }
 0x372   :  { %1001 = vrcp.f32 %v697_v57 }
 0x373   :  { %1003 = vtanh.f32 %v500_v7 }
 0x374   :  { %1005 = vtanh.f32 %v501_v8 }
 0x375   :  { %1007 = vtanh.f32 %v502_v10 }
 0x376   :  { %1009 = vtanh.f32 %v504_v11 }
 0x377   :  { %1011 = vtanh.f32 %v505_v13 }
 0x378   :  { %1013 = vtanh.f32 %v503_v14 }
 0x379   :  { %1015 = vtanh.f32 %v506_v15 }
 0x37a   :  { %1017 = vtanh.f32 %v507_v16 }
 0x37e   :  { %v1000_v58 = vpop.eup %999 }
 0x37f   :  { %v701_v59 = vmul.f32 %v1000_v58, %v996_v42  ;;  %v1002_v61 = vpop.eup %1001 }
 0x380   :  { %v703_v62 = vmul.f32 %v1002_v61, %v998_v43  ;;  %v1004_v17 = vpop.eup %1003 }
 0x381   :  { %706 = vperm.xlu0 %962, %v701_v59   ;;  %v1006_v18 = vpop.eup %1005  ;;  %v521_v21 = vsel %vm518_vm8, %v1004_v17, 0.0 }
 0x382   :  { %v1008_v19 = vpop.eup %1007  ;;  %v522_v23 = vsel %vm518_vm8, %v1006_v18, 0.0  ;;  %v529_v25 = vsel %vm219_vm2, %v521_v21, 0.0 }
 0x383   :  { %v1010_v22 = vpop.eup %1009  ;;  %v523_v29 = vsel %vm518_vm8, %v1008_v19, 0.0  ;;  %v536_v30 = vsel %vm219_vm2, %v522_v23, 0.0  ;;  %v530_v35 = vrot.slane %v529_v25, 4 }
 0x384   :  { %v1012_v24 = vpop.eup %1011  ;;  %v525_v31 = vsel %vm518_vm8, %v1010_v22, 0.0  ;;  %v537_v37 = vrot.slane %v536_v30, 4  ;;  %v543_v40 = vsel %vm219_vm2, %v523_v29, 0.0 }
 0x385   :  { %711 = vperm.xlu0 %962, %v703_v62   ;;  %v1014_v27 = vpop.eup %1013  ;;  %v526_v33 = vsel %vm518_vm8, %v1012_v24, 0.0  ;;  %v557_v38 = vsel %vm219_vm2, %v525_v31, 0.0  ;;  %v531_v45 = vadd.f32 %v530_v35, %v529_v25  ;;  %v544_v46 = vrot.slane %v543_v40, 4 }
 0x386   :  { %v1016_v32 = vpop.eup %1015  ;;  %v524_v39 = vsel %vm518_vm8, %v1014_v27, 0.0  ;;  %v564_v43 = vsel %vm219_vm2, %v526_v33, 0.0  ;;  %v558_v44 = vrot.slane %v557_v38, 4  ;;  %v538_v49 = vadd.f32 %v537_v37, %v536_v30 }
 0x387   :  { %v1018_v41 = vpop.eup %1017  ;;  %v527_v42 = vsel %vm518_vm8, %v1016_v32, 0.0  ;;  %v550_v47 = vsel %vm219_vm2, %v524_v39, 0.0  ;;  %v565_v48 = vrot.slane %v564_v43, 4  ;;  %v532_v53 = vrot.slane %v531_v45, 2 }
 0x388   :  { %v528_v50 = vsel %vm518_vm8, %v1018_v41, 0.0  ;;  %v571_v51 = vsel %vm219_vm2, %v527_v42, 0.0  ;;  %v551_v52 = vrot.slane %v550_v47, 4  ;;  %v545_v54 = vadd.f32 %v544_v46, %v543_v40 }
 0x389   :  { %v572_v55 = vrot.slane %v571_v51, 4  ;;  %v578_v56 = vsel %vm219_vm2, %v528_v50, 0.0  ;;  %v539_v57 = vrot.slane %v538_v49, 2  ;;  %v559_v58 = vadd.f32 %v558_v44, %v557_v38 }
 0x38a   :  { %v566_v59 = vadd.f32 %v565_v48, %v564_v43  ;;  %v552_v61 = vadd.f32 %v551_v52, %v550_v47  ;;  %v579_v62 = vrot.slane %v578_v56, 4  ;;  %v533_v63 = vadd.f32 %v532_v53, %v531_v45 }
 0x38b   :  { %v546_v0 = vrot.slane %v545_v54, 2  ;;  %v573_v1 = vadd.f32 %v572_v55, %v571_v51  ;;  %v540_v2 = vadd.f32 %v539_v57, %v538_v49  ;;  %v560_v3 = vrot.slane %v559_v58, 2 }
 0x38c   :  { %v567_v28 = vrot.slane %v566_v59, 2  ;;  %v553_v4 = vrot.slane %v552_v61, 2  ;;  %v580_v5 = vadd.f32 %v579_v62, %v578_v56  ;;  %v534_v7 = vrot.slane %v533_v63, 1 }
 0x38d   :  { %v547_v8 = vadd.f32 %v546_v0, %v545_v54  ;;  %v574_v9 = vrot.slane %v573_v1, 2  ;;  %v541_v11 = vrot.slane %v540_v2, 1  ;;  %v561_v13 = vadd.f32 %v560_v3, %v559_v58 }
 0x38e   :  { %v568_v14 = vadd.f32 %v567_v28, %v566_v59  ;;  %v554_v16 = vadd.f32 %v553_v4, %v552_v61  ;;  %v581_v17 = vrot.slane %v580_v5, 2  ;;  %v535_v21 = vadd.f32 %v534_v7, %v533_v63 }
 0x38f   :  { %v548_v22 = vrot.slane %v547_v8, 1  ;;  %v575_v23 = vadd.f32 %v574_v9, %v573_v1  ;;  %v542_v25 = vadd.f32 %v541_v11, %v540_v2  ;;  %v562_v27 = vrot.slane %v561_v13, 1 }
 0x390   :  { %v569_v29 = vrot.slane %v568_v14, 1  ;;  %v555_v31 = vrot.slane %v554_v16, 1  ;;  %v582_v32 = vadd.f32 %v581_v17, %v580_v5 }
 0x391   :  { %v549_v37 = vadd.f32 %v548_v22, %v547_v8  ;;  %v576_v38 = vrot.slane %v575_v23, 1  ;;  %v766_v39 = vsel %vm610_vm3, %v542_v25, %v535_v21  ;;  %v563_v40 = vadd.f32 %v562_v27, %v561_v13 }
 0x392   :  { %v570_v41 = vadd.f32 %v569_v29, %v568_v14  ;;  %v556_v44 = vadd.f32 %v555_v31, %v554_v16 }
 0x393   :  { %v767_v47 = vsel %vm613_vm4, %v549_v37, %v766_v39  ;;  %v577_v48 = vadd.f32 %v576_v38, %v575_v23 }
 0x394   :  { %v769_v49 = vsel %vm610_vm3, %v570_v41, %v563_v40  ;;  %v768_v52 = vsel %vm616_vm5, %v556_v44, %v767_v47 }
 0x395   :  { %v770_v56 = vsel %vm613_vm4, %v577_v48, %v769_v49 }
 0x3fc   :  { %v707_v6 = vpop.permute.xlu0 %706 }
 0x3fd   :  { %v736_v10 = vmul.f32 %v1282_v60, %v707_v6 }
 0x3ff   :  { %v738_v15 = vsel %vm626_vm6, %v736_v10, 0.0 }
 0x400   :  { %v739_v18 = vrot.slane %v738_v15, 4  ;;  %v712_v19 = vpop.permute.xlu0 %711 }
 0x401   :  { %v737_v24 = vmul.f32 %v1292_v20, %v712_v19  ;;  %v583_v20 = vrot.slane %v582_v32, 1 }
 0x402   :  { %v740_v30 = vadd.f32 %v739_v18, %v738_v15 }
 0x403   :  { %v745_v60 = vsel %vm626_vm6, %v737_v24, 0.0  ;;  %v584_v53 = vadd.f32 %v583_v20, %v582_v32 }
 0x404   :  { %v741_v33 = vrot.slane %v740_v30, 2  ;;  %v746_v35 = vrot.slane %v745_v60, 4 }
 0x405   :  { %v771_v59 = vsel %vm616_vm5, %v584_v53, %v770_v56 }
 0x406   :  { %v742_v42 = vadd.f32 %v741_v33, %v740_v30  ;;  %v747_v43 = vadd.f32 %v746_v35, %v745_v60  ;;  %v911_v30 = vmul.f32 -1.442695, %v1308_v34 }
 0x408   :  { %v748_v45 = vrot.slane %v747_v43, 2  ;;  %v743_v46 = vrot.slane %v742_v42, 1 }
 0x40a   :  { %v749_v50 = vadd.f32 %v748_v45, %v747_v43  ;;  %v744_v51 = vadd.f32 %v743_v46, %v742_v42 }
 0x40c   :  { %v774_v54 = vmul.f32 %v768_v52, %v744_v51  ;;  %v750_v55 = vrot.slane %v749_v50, 1 }
 0x40e   :  { %v776_v57 = vsel %vm626_vm6, %v774_v54, 0.0  ;;  %v751_v58 = vadd.f32 %v750_v55, %v749_v50 }
 0x40f   :  { %777 = vadd.xlane.f32.xlu1 %v776_v57 }
 0x410   :  { %v775_v61 = vmul.f32 %v771_v59, %v751_v58 }
 0x412   :  { %v779_v62 = vsel %vm626_vm6, %v775_v61, 0.0 }
 0x413   :  { %780 = vadd.xlane.f32.xlu0 %v779_v62 }
 0x498   :  { %v778_v63 = vpop.xlane.xlu1 %777 }
 0x499   :  { %v787_v1 = vrot.slane %v778_v63, %v1299_v26 }
 0x49c   :  { %v781_v0 = vpop.xlane.xlu0 %780 }
 0x49d   :  { %v791_v2 = vrot.slane %v781_v0, %v1299_v26 }
 0x49f   :  { %v792_v3 = vsel %vm610_vm3, %v791_v2, %v787_v1 }
 0x4a0   :  { %v794_v28 = vsel %vm647_vm7, %v792_v3, -inf }
 0x4a1   :  { %795 = vmax.xlane.f32.xlu1 %v794_v28 }
 0x52a   :  { %v796_v4 = vpop.xlane.xlu1 %795 }
 0x52b   :  { %v801_v5 = vrot.slane %v796_v4, %v1275_v36  ;;  %v805_v6 = vrot.slane %v796_v4, %v1306_v12 }
 0x52d   :  { %v808_v7 = vsub.f32 %v778_v63, %v801_v5  ;;  %v809_v8 = vsub.f32 %v781_v0, %v805_v6 }
 0x52f   :  { %v810_v9 = vmul.f32 1.442695, %v808_v7  ;;  %v812_v10 = vmul.f32 1.442695, %v809_v8 }
 0x531   :  { %1019 = vpow2.f32 %v810_v9 }
 0x532   :  { %1021 = vpow2.f32 %v812_v10 }
 0x53e   :  { %v1020_v11 = vpop.eup %1019 }
 0x53f   :  { %817 = vperm.xlu1 %961, %v1020_v11   ;;  %v1022_v13 = vpop.eup %1021 }
 0x543   :  { %820 = vperm.xlu1 %961, %v1022_v13  }
 0x5ba   :  { %v818_v14 = vpop.permute.xlu1 %817 }
 0x5bb   :  { %v825_v16 = vrot.slane %v818_v14, %v1299_v26 }
 0x5be   :  { %v821_v15 = vpop.permute.xlu1 %820 }
 0x5bf   :  { %v829_v17 = vrot.slane %v821_v15, %v1299_v26 }
 0x5c1   :  { %v830_v18 = vsel %vm610_vm3, %v829_v17, %v825_v16 }
 0x5c2   :  { %v832_v19 = vsel %vm647_vm7, %v830_v18, 0.0 }
 0x5c3   :  { %833 = vadd.xlane.f32.xlu1 %v832_v19 }
 0x64c   :  { %v834_v21 = vpop.xlane.xlu1 %833 }
 0x64d   :  { %v839_v22 = vrot.slane %v834_v21, %v1275_v36  ;;  %v843_v23 = vrot.slane %v834_v21, %v1306_v12 }
 0x64f   :  { %1023 = vrcp.f32 %v839_v22 }
 0x650   :  { %1025 = vrcp.f32 %v843_v23 }
 0x651   :  { %1027 = vpow2.f32 %v911_v30 }
 0x65c   :  { %v1024_v24 = vpop.eup %1023 }
 0x65d   :  { %v847_v25 = vmul.f32 %v1024_v24, %v1020_v11  ;;  %v1026_v27 = vpop.eup %1025 }
 0x65e   :  { %v849_v29 = vmul.f32 %v1026_v27, %v1022_v13  ;;  %v1028_v60 = vpop.eup %1027 }
 0x65f   :  { %853 = vperm.xlu0 %962, %v847_v25   ;;  %v755_v31 = vadd.f32 1.0, %v1028_v60 }
 0x661   :  { %1029 = vrcp.f32 %v755_v31 }
 0x663   :  { %856 = vperm.xlu0 %962, %v849_v29  }
 0x66e   :  { %v1030_v35 = vpop.eup %1029 }
 0x6da   :  { %v854_v32 = vpop.permute.xlu0 %853 }
 0x6db   :  { %v861_v36 = vrot.slane %v854_v32, %v1299_v26 }
 0x6de   :  { %v857_v33 = vpop.permute.xlu0 %856 }
 0x6df   :  { %v865_v12 = vrot.slane %v857_v33, %v1299_v26 }
 0x6e1   :  { %v866_v37 = vsel %vm610_vm3, %v865_v12, %v861_v36 }
 0x6e2   :  { %v868_v38 = vmul.f32 %v1030_v35, %v866_v37 }
 0x6e4   :  { %869 = vst.msk [vmem:[#allocation11] sm:$0x3] %vm647_vm7, %v868_v38 }
 0x6e5   :  { %1142 = shalt.err (!%p1139_p1)
}
 0x6e6   :  { %879 = dma.vmem_to_hbm [thread:$0]  %s877_s15, 32, %s1396_s9, [#allocation4]  }
 0x6e7   :  { %1157 = dma.done.wait [#allocation4], 32  }
 0x6e8   :  { %1158 = vsyncadd [#allocation4], 4294967264 }
 0x6e9   :  { %883 = vsyncpa [#allocation3], 1 }
 0x6ea   :  { %884 = vsyncpa [#allocation6], 1 }
 0x6eb   :  { %885 = vsyncpa [#allocation9], 1 }
 0x6ec   :  { %886 = vsyncpa [#allocation4], 1 }

</bundles_post_ra>
